<compile_context>
chip_gen: v5e
topology: v5e:2x2
jax: 0.10.0
libtpu: 0.0.40
codegen_flags: <defaults>
</compile_context>

<pallas_src>
import jax
import jax.numpy as jnp
from jax.experimental import pallas as pl
from jax.experimental.pallas import tpu as pltpu

BN_EPS = 1e-5
LANE = 128
NEG_BIG = -1e30          # shift for padded softmax logits -> prob exactly 0


def _round_up(v, m):
    return (v + m - 1) // m * m


# ---------------------------------------------------------------------------
# Single fused kernel (one batch tile per grid step)
# ---------------------------------------------------------------------------
def _multi_heads_kernel(x_ref, wh_ref, shh_ref, alh_ref,
                        w1_ref, sh1_ref, al1_ref,
                        w2_ref, sh2_ref, al2_ref, o_ref):
    F_pad = w1_ref.shape[0]          # padded feature_dim
    INTER_pad = w1_ref.shape[1]      # padded GDN intermediate dim
    G_pad = w2_ref.shape[1]          # padded groups (softmax width)
    HW = wh_ref.shape[1]             # (G+1) * F_pad
    G = HW // F_pad - 1              # real number of groups

    x = x_ref[...]                                              # bf16 [TB, d_in]

    # --- instance_fc + all group_fc heads: one lane-concatenated bf16 matmul --
    heads = jnp.dot(x, wh_ref[...], preferred_element_type=jnp.float32)
    heads = heads + shh_ref[...]                                # folded BN + bias
    heads = jnp.where(heads >= 0.0, heads, alh_ref[...] * heads)   # PReLU (f32)

    instance = heads[:, :F_pad]                                 # [TB, F_pad]

    # --- GDN fc1 --------------------------------------------------------------
    gi = jnp.dot(instance.astype(jnp.bfloat16), w1_ref[...],
                 preferred_element_type=jnp.float32)
    gi = gi + sh1_ref[...]
    gi = jnp.where(gi >= 0.0, gi, al1_ref[...] * gi)            # [TB, INTER_pad]

    # --- GDN fc2 + softmax (pad lanes carry -1e30 shift -> prob 0) ------------
    lo = jnp.dot(gi.astype(jnp.bfloat16), w2_ref[...],
                 preferred_element_type=jnp.float32)
    lo = lo + sh2_ref[...]
    lo = jnp.where(lo >= 0.0, lo, al2_ref[...] * lo)            # [TB, G_pad]

    m = jnp.max(lo, axis=1, keepdims=True)
    e = jnp.exp(lo - m)
    denom = jnp.sum(e, axis=1, keepdims=True)
    prob = e * pl.reciprocal(denom, approx=True)                # [TB, G_pad]

    # --- group-weighted ensemble: per-group FMA over 128-aligned slabs --------
    ens = prob[:, 0:1] * heads[:, F_pad:2 * F_pad]
    for g in range(1, G):
        ens = ens + prob[:, g:g + 1] * heads[:, (1 + g) * F_pad:(2 + g) * F_pad]
    final = instance + ens                                      # [TB, F_pad]

    # --- lane-dense packed output: [gi_pad | final_pad | prob_pad] ------------
    # All three stores are 128-lane-aligned full-width (unmasked) stores.
    o_ref[:, 0:INTER_pad] = gi
    o_ref[:, INTER_pad:INTER_pad + F_pad] = final
    o_ref[:, INTER_pad + F_pad:INTER_pad + F_pad + G_pad] = prob


# ---------------------------------------------------------------------------
# Wrapper
# ---------------------------------------------------------------------------
def multi_heads_forward(x, params):
    F, G, INTER = params["F"], params["G"], params["INTER"]
    F_pad, G_pad, INTER_pad = params["F_pad"], params["G_pad"], params["INTER_pad"]
    B, d_in = x.shape
    HW = (G + 1) * F_pad
    OUT_W = INTER_pad + F_pad + G_pad

    # Batch tiling: large row tiles for pipelining / HBM roofline.
    TB = min(_round_up(B, 8), 512)
    B_pad = _round_up(B, TB)
    xb = x.astype(jnp.bfloat16)                    # halves x DMA bytes
    if B_pad != B:
        xb = jnp.pad(xb, ((0, B_pad - B), (0, 0)))
    grid = (B_pad // TB,)

    weights = (params["w_heads"], params["shift_heads"], params["alpha_heads"],
               params["w1"], params["shift1"], params["alpha1"],
               params["w2"], params["shift2"], params["alpha2"])

    def _resident(a):
        return pl.BlockSpec(a.shape, lambda i: (0, 0))   # VMEM-resident across tiles

    weight_bytes = sum(int(w.size) * w.dtype.itemsize for w in weights)
    # 2x double-buffered x tile + 2x out tile + rough in-register intermediates.
    tile_bytes = (2 * TB * d_in * 2 + 2 * TB * OUT_W * 4
                  + TB * (HW + INTER_pad + G_pad + 2 * F_pad) * 4)
    vmem_limit = int(min(max(4 * (weight_bytes + tile_bytes), 16 << 20), 64 << 20))

    flops = 2 * B_pad * (d_in * HW + F_pad * INTER_pad + INTER_pad * G_pad
                         + G * F_pad)
    bytes_accessed = (int(xb.size) * 2 + weight_bytes + B_pad * OUT_W * 4)
    cost = pl.CostEstimate(flops=int(flops),
                           transcendentals=int(B_pad * G_pad),
                           bytes_accessed=int(bytes_accessed))

    out = pl.pallas_call(
        _multi_heads_kernel,
        out_shape=jax.ShapeDtypeStruct((B_pad, OUT_W), jnp.float32),
        grid_spec=pltpu.PrefetchScalarGridSpec(
            num_scalar_prefetch=0,
            grid=grid,
            in_specs=[pl.BlockSpec((TB, d_in), lambda i: (i, 0))]
                     + [_resident(w) for w in weights],
            out_specs=pl.BlockSpec((TB, OUT_W), lambda i: (i, 0)),
        ),
        compiler_params=pltpu.CompilerParams(
            dimension_semantics=("parallel",),          # safe: label mean is in wrapper
            vmem_limit_bytes=vmem_limit),
        cost_estimate=cost,
    )(xb, *weights)

    group_inter = out[:B, :INTER]
    final = out[:B, INTER_pad:INTER_pad + F]
    group_prob = out[:B, INTER_pad + F_pad:INTER_pad + F_pad + G]

    # Group label needs the full-batch mean of prob -> compute cross-tile-safe
    # in XLA from the kernel's prob output (tiny [B, G] work).
    E = jnp.mean(group_prob, axis=0, keepdims=True)
    u = (group_prob - E) * (1.0 / G) + 1.0 / G
    group_label = jnp.argmax(u, axis=1).astype(jnp.int32)
    return group_inter, final, group_prob, group_label


# ---------------------------------------------------------------------------
# Parameter preparation (host-side, outside the hot path)
# ---------------------------------------------------------------------------
def _fold_fc(w, b, scale, shift, alpha, pad_in, pad_out,
             pad_shift_value=0.0, pad_alpha_value=None):
    # (x @ w + b) * scale + shift == x @ (w*scale) + (b*scale + shift)
    d_in, d_out = w.shape
    w_eff = w * scale[None, :]
    sh_eff = b * scale + shift
    W = jnp.zeros((pad_in, pad_out), jnp.float32).at[:d_in, :d_out].set(w_eff)
    SH = jnp.full((1, pad_out), pad_shift_value, jnp.float32).at[0, :d_out].set(sh_eff)
    if pad_alpha_value is None:
        AL = jnp.full((1, pad_out), alpha, jnp.float32)
    else:
        AL = jnp.full((1, pad_out), pad_alpha_value, jnp.float32)
        AL = AL.at[0, :d_out].set(jnp.full((d_out,), alpha, jnp.float32))
    return W.astype(jnp.bfloat16), SH, AL


def prepare_params(head_fcs, fc1, fc2, feature_dim, groups, intermediate_dim):
    """head_fcs: [instance_fc, group_fc_0, ..., group_fc_{G-1}] raw FC params."""
    F_pad = _round_up(feature_dim, LANE)
    INTER_pad = _round_up(intermediate_dim, LANE)
    G_pad = _round_up(groups, LANE)

    ws, shs, als = [], [], []
    for (w, b, scale, shift, alpha) in head_fcs:
        W, SH, AL = _fold_fc(w, b, scale, shift, alpha,
                             pad_in=w.shape[0], pad_out=F_pad)
        ws.append(W); shs.append(SH); als.append(AL)
    w_heads = jnp.concatenate(ws, axis=1)           # bf16 [d_in, (G+1)*F_pad]
    shift_heads = jnp.concatenate(shs, axis=1)      # f32  [1, (G+1)*F_pad]
    alpha_heads = jnp.concatenate(als, axis=1)      # f32  [1, (G+1)*F_pad]

    w1, sh1, al1 = _fold_fc(*fc1, pad_in=F_pad, pad_out=INTER_pad)
    # fc2 pad lanes: weight 0, shift -1e30, alpha 1.0  ->  softmax prob exactly 0.
    w2, sh2, al2 = _fold_fc(*fc2, pad_in=INTER_pad, pad_out=G_pad,
                            pad_shift_value=NEG_BIG, pad_alpha_value=1.0)

    return dict(w_heads=w_heads, shift_heads=shift_heads, alpha_heads=alpha_heads,
                w1=w1, shift1=sh1, alpha1=al1,
                w2=w2, shift2=sh2, alpha2=al2,
                F=feature_dim, G=groups, INTER=intermediate_dim,
                F_pad=F_pad, INTER_pad=INTER_pad, G_pad=G_pad)


# ---------------------------------------------------------------------------
# Pure-JAX reference (unfused, f32, follows the torch module op order)
# ---------------------------------------------------------------------------
def _fc_ref(x, w, b, scale, shift, alpha):
    y = x @ w + b
    y = y * scale + shift
    return jnp.where(y >= 0.0, y, alpha * y)


def multi_heads_ref(x, head_fcs, fc1, fc2, groups):
    heads = [_fc_ref(x, *p) for p in head_fcs]
    instance = heads[0]
    v_g = heads[1:]
    group_inter = _fc_ref(instance, *fc1)
    logits = _fc_ref(group_inter, *fc2)
    prob = jax.nn.softmax(logits, axis=1)
    ens = sum(prob[:, k:k + 1] * v_g[k] for k in range(groups))
    final = instance + ens
    E = prob.mean(axis=0)
    u = (prob - E[None, :]) / groups + 1.0 / groups
    label = jnp.argmax(u, axis=1)
    return group_inter, final, prob, label


if __name__ == "__main__":
    # small shapes: batch=8, backbone_fc_dim=32, feature_dim=16,
    # groups=4, intermediate_dim=32
    B, BACKBONE, FEAT, GROUPS, INTER = 8, 32, 16, 4, 32

    root = jax.random.PRNGKey(0)
    k_x, k_heads, k_fc1, k_fc2 = jax.random.split(root, 4)

    def init_fc(key, d_in, d_out):
        ks = jax.random.split(key, 6)
        w = jax.random.normal(ks[0], (d_in, d_out), jnp.float32) * 0.1
        b = jax.random.normal(ks[1], (d_out,), jnp.float32) * 0.05
        gamma = jax.random.uniform(ks[2], (d_out,), jnp.float32, 0.5, 1.5)
        beta = jax.random.normal(ks[3], (d_out,), jnp.float32) * 0.1
        rmean = jax.random.normal(ks[4], (d_out,), jnp.float32) * 0.1
        rvar = jax.random.uniform(ks[5], (d_out,), jnp.float32, 0.5, 1.5)
        scale = gamma / jnp.sqrt(rvar + BN_EPS)     # folded eval-mode BN
        shift = beta - rmean * scale
        alpha = jnp.float32(0.25)                   # torch PReLU default
        return w, b, scale, shift, alpha

    head_keys = jax.random.split(k_heads, GROUPS + 1)
    head_p = [init_fc(head_keys[i], BACKBONE, FEAT) for i in range(GROUPS + 1)]
    fc1_p = init_fc(k_fc1, FEAT, INTER)
    fc2_p = init_fc(k_fc2, INTER, GROUPS)

    params = prepare_params(head_p, fc1_p, fc2_p, FEAT, GROUPS, INTER)
    x = jax.random.normal(k_x, (B, BACKBONE), jnp.float32)

    outs = jax.block_until_ready(multi_heads_forward(x, params))
    group_inter, final, group_prob, group_label = outs

    ref_gi, ref_final, ref_prob, ref_label = multi_heads_ref(
        x, head_p, fc1_p, fc2_p, GROUPS)

    assert group_inter.shape == (B, INTER)
    assert final.shape == (B, FEAT)
    assert group_prob.shape == (B, GROUPS)
    assert group_label.shape == (B,)

    # bf16 MXU operands + approx reciprocal -> loosened tolerances vs f32 ref.
    assert jnp.allclose(group_inter, ref_gi, atol=3e-2, rtol=3e-2)
    assert jnp.allclose(final, ref_final, atol=3e-2, rtol=3e-2)
    assert jnp.allclose(group_prob, ref_prob, atol=3e-2, rtol=3e-2)

    # Label: exact match required except where the ref has a near-tie that
    # bf16 rounding could legitimately flip.
    u_ref = (ref_prob - ref_prob.mean(axis=0, keepdims=True)) / GROUPS + 1.0 / GROUPS
    srt = jnp.sort(u_ref, axis=1)
    gap = srt[:, -1] - srt[:, -2]
    ok = (group_label == ref_label.astype(jnp.int32)) | (gap < 2e-3)
    assert bool(jnp.all(ok))

    print("KERNEL_OK")
</pallas_src>

<mosaic_0001>
module attributes {stable_mosaic.version = 11 : i64} {
  func.func @_multi_heads_kernel(%arg0: i32, %arg1: memref<8x32xbf16, #tpu.memory_space<vmem>>, %arg2: memref<32x640xbf16, #tpu.memory_space<vmem>>, %arg3: memref<1x640xf32, #tpu.memory_space<vmem>>, %arg4: memref<1x640xf32, #tpu.memory_space<vmem>>, %arg5: memref<128x128xbf16, #tpu.memory_space<vmem>>, %arg6: memref<1x128xf32, #tpu.memory_space<vmem>>, %arg7: memref<1x128xf32, #tpu.memory_space<vmem>>, %arg8: memref<128x128xbf16, #tpu.memory_space<vmem>>, %arg9: memref<1x128xf32, #tpu.memory_space<vmem>>, %arg10: memref<1x128xf32, #tpu.memory_space<vmem>>, %arg11: memref<8x384xf32, #tpu.memory_space<vmem>>) attributes {dimension_semantics = [#tpu.dimension_semantics<parallel>], iteration_bounds = array<i64: 1>, scalar_prefetch = 0 : i64, scratch_operands = 0 : i64, tpu.core_type = #tpu.core_type<tc>, window_params = [{transform_indices = @transform_0, window_bounds = array<i64: 8, 32>}, {pipeline_mode = #tpu.pipeline_mode<synchronous>, transform_indices = @transform_1, window_bounds = array<i64: 32, 640>}, {pipeline_mode = #tpu.pipeline_mode<synchronous>, transform_indices = @transform_2, window_bounds = array<i64: 1, 640>}, {pipeline_mode = #tpu.pipeline_mode<synchronous>, transform_indices = @transform_3, window_bounds = array<i64: 1, 640>}, {pipeline_mode = #tpu.pipeline_mode<synchronous>, transform_indices = @transform_4, window_bounds = array<i64: 128, 128>}, {pipeline_mode = #tpu.pipeline_mode<synchronous>, transform_indices = @transform_5, window_bounds = array<i64: 1, 128>}, {pipeline_mode = #tpu.pipeline_mode<synchronous>, transform_indices = @transform_6, window_bounds = array<i64: 1, 128>}, {pipeline_mode = #tpu.pipeline_mode<synchronous>, transform_indices = @transform_7, window_bounds = array<i64: 128, 128>}, {pipeline_mode = #tpu.pipeline_mode<synchronous>, transform_indices = @transform_8, window_bounds = array<i64: 1, 128>}, {pipeline_mode = #tpu.pipeline_mode<synchronous>, transform_indices = @transform_9, window_bounds = array<i64: 1, 128>}, {transform_indices = @transform_10, window_bounds = array<i64: 8, 384>}]} {
    %c0 = arith.constant 0 : index
    %c0_0 = arith.constant 0 : index
    %0 = vector.load %arg1[%c0, %c0_0] : memref<8x32xbf16, #tpu.memory_space<vmem>>, vector<8x32xbf16>
    %c0_1 = arith.constant 0 : index
    %c0_2 = arith.constant 0 : index
    %1 = vector.load %arg2[%c0_1, %c0_2] : memref<32x640xbf16, #tpu.memory_space<vmem>>, vector<32x640xbf16>
    %cst = arith.constant dense<0.000000e+00> : vector<8x640xf32>
    %2 = tpu.matmul %0, %1, %cst {dimension_numbers = #tpu.dot_dimension_numbers<[1], [0], [0], [1], [0, 0, 1, 1], [], []>} : vector<8x32xbf16>, vector<32x640xbf16>, vector<8x640xf32> -> vector<8x640xf32>
    %c0_3 = arith.constant 0 : index
    %c0_4 = arith.constant 0 : index
    %3 = vector.load %arg3[%c0_3, %c0_4] : memref<1x640xf32, #tpu.memory_space<vmem>>, vector<1x640xf32>
    %4 = vector.broadcast %3 : vector<1x640xf32> to vector<8x640xf32>
    %5 = arith.addf %2, %4 : vector<8x640xf32>
    %cst_5 = arith.constant 0.000000e+00 : f32
    %6 = vector.broadcast %cst_5 : f32 to vector<8x640xf32>
    %7 = arith.cmpf oge, %5, %6 : vector<8x640xf32>
    %c0_6 = arith.constant 0 : index
    %c0_7 = arith.constant 0 : index
    %8 = vector.load %arg4[%c0_6, %c0_7] : memref<1x640xf32, #tpu.memory_space<vmem>>, vector<1x640xf32>
    %9 = vector.broadcast %8 : vector<1x640xf32> to vector<8x640xf32>
    %10 = arith.mulf %9, %5 : vector<8x640xf32>
    %11 = arith.select %7, %5, %10 : vector<8x640xi1>, vector<8x640xf32>
    %12 = vector.extract_strided_slice %11 {offsets = [0, 0], sizes = [8, 128], strides = [1, 1]} : vector<8x640xf32> to vector<8x128xf32>
    %13 = arith.truncf %12 : vector<8x128xf32> to vector<8x128xbf16>
    %c0_8 = arith.constant 0 : index
    %c0_9 = arith.constant 0 : index
    %14 = vector.load %arg5[%c0_8, %c0_9] : memref<128x128xbf16, #tpu.memory_space<vmem>>, vector<128x128xbf16>
    %cst_10 = arith.constant dense<0.000000e+00> : vector<8x128xf32>
    %15 = tpu.matmul %13, %14, %cst_10 {dimension_numbers = #tpu.dot_dimension_numbers<[1], [0], [0], [1], [0, 0, 1, 1], [], []>} : vector<8x128xbf16>, vector<128x128xbf16>, vector<8x128xf32> -> vector<8x128xf32>
    %c0_11 = arith.constant 0 : index
    %c0_12 = arith.constant 0 : index
    %16 = vector.load %arg6[%c0_11, %c0_12] : memref<1x128xf32, #tpu.memory_space<vmem>>, vector<1x128xf32>
    %17 = vector.broadcast %16 : vector<1x128xf32> to vector<8x128xf32>
    %18 = arith.addf %15, %17 : vector<8x128xf32>
    %cst_13 = arith.constant 0.000000e+00 : f32
    %19 = vector.broadcast %cst_13 : f32 to vector<8x128xf32>
    %20 = arith.cmpf oge, %18, %19 : vector<8x128xf32>
    %c0_14 = arith.constant 0 : index
    %c0_15 = arith.constant 0 : index
    %21 = vector.load %arg7[%c0_14, %c0_15] : memref<1x128xf32, #tpu.memory_space<vmem>>, vector<1x128xf32>
    %22 = vector.broadcast %21 : vector<1x128xf32> to vector<8x128xf32>
    %23 = arith.mulf %22, %18 : vector<8x128xf32>
    %24 = arith.select %20, %18, %23 : vector<8x128xi1>, vector<8x128xf32>
    %25 = arith.truncf %24 : vector<8x128xf32> to vector<8x128xbf16>
    %c0_16 = arith.constant 0 : index
    %c0_17 = arith.constant 0 : index
    %26 = vector.load %arg8[%c0_16, %c0_17] : memref<128x128xbf16, #tpu.memory_space<vmem>>, vector<128x128xbf16>
    %cst_18 = arith.constant dense<0.000000e+00> : vector<8x128xf32>
    %27 = tpu.matmul %25, %26, %cst_18 {dimension_numbers = #tpu.dot_dimension_numbers<[1], [0], [0], [1], [0, 0, 1, 1], [], []>} : vector<8x128xbf16>, vector<128x128xbf16>, vector<8x128xf32> -> vector<8x128xf32>
    %c0_19 = arith.constant 0 : index
    %c0_20 = arith.constant 0 : index
    %28 = vector.load %arg9[%c0_19, %c0_20] : memref<1x128xf32, #tpu.memory_space<vmem>>, vector<1x128xf32>
    %29 = vector.broadcast %28 : vector<1x128xf32> to vector<8x128xf32>
    %30 = arith.addf %27, %29 : vector<8x128xf32>
    %cst_21 = arith.constant 0.000000e+00 : f32
    %31 = vector.broadcast %cst_21 : f32 to vector<8x128xf32>
    %32 = arith.cmpf oge, %30, %31 : vector<8x128xf32>
    %c0_22 = arith.constant 0 : index
    %c0_23 = arith.constant 0 : index
    %33 = vector.load %arg10[%c0_22, %c0_23] : memref<1x128xf32, #tpu.memory_space<vmem>>, vector<1x128xf32>
    %34 = vector.broadcast %33 : vector<1x128xf32> to vector<8x128xf32>
    %35 = arith.mulf %34, %30 : vector<8x128xf32>
    %36 = arith.select %32, %30, %35 : vector<8x128xi1>, vector<8x128xf32>
    %cst_24 = arith.constant dense<0xFF800000> : vector<8xf32>
    %37 = vector.multi_reduction <maximumf>, %36, %cst_24 [1] : vector<8x128xf32> to vector<8xf32>
    %38 = vector.shape_cast %37 : vector<8xf32> to vector<8x1xf32>
    %39 = vector.broadcast %38 : vector<8x1xf32> to vector<8x128xf32>
    %40 = arith.subf %36, %39 : vector<8x128xf32>
    %41 = math.exp %40 : vector<8x128xf32>
    %cst_25 = arith.constant dense<0.000000e+00> : vector<8xf32>
    %42 = vector.multi_reduction <add>, %41, %cst_25 [1] : vector<8x128xf32> to vector<8xf32>
    %43 = vector.shape_cast %42 : vector<8xf32> to vector<8x1xf32>
    %44 = tpu.reciprocal %43 {approx = true} : vector<8x1xf32> -> vector<8x1xf32>
    %45 = vector.broadcast %44 : vector<8x1xf32> to vector<8x128xf32>
    %46 = arith.mulf %41, %45 : vector<8x128xf32>
    %47 = vector.extract_strided_slice %46 {offsets = [0, 0], sizes = [8, 1], strides = [1, 1]} : vector<8x128xf32> to vector<8x1xf32>
    %48 = vector.extract_strided_slice %11 {offsets = [0, 128], sizes = [8, 128], strides = [1, 1]} : vector<8x640xf32> to vector<8x128xf32>
    %49 = vector.broadcast %47 : vector<8x1xf32> to vector<8x128xf32>
    %50 = arith.mulf %49, %48 : vector<8x128xf32>
    %51 = vector.extract_strided_slice %46 {offsets = [0, 1], sizes = [8, 1], strides = [1, 1]} : vector<8x128xf32> to vector<8x1xf32>
    %52 = vector.extract_strided_slice %11 {offsets = [0, 256], sizes = [8, 128], strides = [1, 1]} : vector<8x640xf32> to vector<8x128xf32>
    %53 = vector.broadcast %51 : vector<8x1xf32> to vector<8x128xf32>
    %54 = arith.mulf %53, %52 : vector<8x128xf32>
    %55 = arith.addf %50, %54 : vector<8x128xf32>
    %56 = vector.extract_strided_slice %46 {offsets = [0, 2], sizes = [8, 1], strides = [1, 1]} : vector<8x128xf32> to vector<8x1xf32>
    %57 = vector.extract_strided_slice %11 {offsets = [0, 384], sizes = [8, 128], strides = [1, 1]} : vector<8x640xf32> to vector<8x128xf32>
    %58 = vector.broadcast %56 : vector<8x1xf32> to vector<8x128xf32>
    %59 = arith.mulf %58, %57 : vector<8x128xf32>
    %60 = arith.addf %55, %59 : vector<8x128xf32>
    %61 = vector.extract_strided_slice %46 {offsets = [0, 3], sizes = [8, 1], strides = [1, 1]} : vector<8x128xf32> to vector<8x1xf32>
    %62 = vector.extract_strided_slice %11 {offsets = [0, 512], sizes = [8, 128], strides = [1, 1]} : vector<8x640xf32> to vector<8x128xf32>
    %63 = vector.broadcast %61 : vector<8x1xf32> to vector<8x128xf32>
    %64 = arith.mulf %63, %62 : vector<8x128xf32>
    %65 = arith.addf %60, %64 : vector<8x128xf32>
    %66 = arith.addf %12, %65 : vector<8x128xf32>
    %c0_26 = arith.constant 0 : index
    %c0_27 = arith.constant 0 : index
    %67 = vector.load %arg11[%c0_26, %c0_27] : memref<8x384xf32, #tpu.memory_space<vmem>>, vector<8x128xf32>
    tpu.vector_store %arg11[%c0_26, %c0_27], %24 {strides = array<i32>} : memref<8x384xf32, #tpu.memory_space<vmem>>, vector<8x128xf32>,
    %c0_28 = arith.constant 0 : index
    %c128 = arith.constant 128 : index
    %68 = vector.load %arg11[%c0_28, %c128] : memref<8x384xf32, #tpu.memory_space<vmem>>, vector<8x128xf32>
    tpu.vector_store %arg11[%c0_28, %c128], %66 {strides = array<i32>} : memref<8x384xf32, #tpu.memory_space<vmem>>, vector<8x128xf32>,
    %c0_29 = arith.constant 0 : index
    %c256 = arith.constant 256 : index
    %69 = vector.load %arg11[%c0_29, %c256] : memref<8x384xf32, #tpu.memory_space<vmem>>, vector<8x128xf32>
    tpu.vector_store %arg11[%c0_29, %c256], %46 {strides = array<i32>} : memref<8x384xf32, #tpu.memory_space<vmem>>, vector<8x128xf32>,
    return
  }
  func.func @transform_0(%arg0: i32) -> (i32, i32) {
    %c0_i32 = arith.constant 0 : i32
    %c0_i32_0 = arith.constant 0 : i32
    return %arg0, %c0_i32 : i32, i32
  }
  func.func @transform_1(%arg0: i32) -> (i32, i32) {
    %c0_i32 = arith.constant 0 : i32
    %c0_i32_0 = arith.constant 0 : i32
    %c0_i32_1 = arith.constant 0 : i32
    return %c0_i32, %c0_i32_0 : i32, i32
  }
  func.func @transform_2(%arg0: i32) -> (i32, i32) {
    %c0_i32 = arith.constant 0 : i32
    %c0_i32_0 = arith.constant 0 : i32
    %c0_i32_1 = arith.constant 0 : i32
    return %c0_i32, %c0_i32_0 : i32, i32
  }
  func.func @transform_3(%arg0: i32) -> (i32, i32) {
    %c0_i32 = arith.constant 0 : i32
    %c0_i32_0 = arith.constant 0 : i32
    %c0_i32_1 = arith.constant 0 : i32
    return %c0_i32, %c0_i32_0 : i32, i32
  }
  func.func @transform_4(%arg0: i32) -> (i32, i32) {
    %c0_i32 = arith.constant 0 : i32
    %c0_i32_0 = arith.constant 0 : i32
    %c0_i32_1 = arith.constant 0 : i32
    return %c0_i32, %c0_i32_0 : i32, i32
  }
  func.func @transform_5(%arg0: i32) -> (i32, i32) {
    %c0_i32 = arith.constant 0 : i32
    %c0_i32_0 = arith.constant 0 : i32
    %c0_i32_1 = arith.constant 0 : i32
    return %c0_i32, %c0_i32_0 : i32, i32
  }
  func.func @transform_6(%arg0: i32) -> (i32, i32) {
    %c0_i32 = arith.constant 0 : i32
    %c0_i32_0 = arith.constant 0 : i32
    %c0_i32_1 = arith.constant 0 : i32
    return %c0_i32, %c0_i32_0 : i32, i32
  }
  func.func @transform_7(%arg0: i32) -> (i32, i32) {
    %c0_i32 = arith.constant 0 : i32
    %c0_i32_0 = arith.constant 0 : i32
    %c0_i32_1 = arith.constant 0 : i32
    return %c0_i32, %c0_i32_0 : i32, i32
  }
  func.func @transform_8(%arg0: i32) -> (i32, i32) {
    %c0_i32 = arith.constant 0 : i32
    %c0_i32_0 = arith.constant 0 : i32
    %c0_i32_1 = arith.constant 0 : i32
    return %c0_i32, %c0_i32_0 : i32, i32
  }
  func.func @transform_9(%arg0: i32) -> (i32, i32) {
    %c0_i32 = arith.constant 0 : i32
    %c0_i32_0 = arith.constant 0 : i32
    %c0_i32_1 = arith.constant 0 : i32
    return %c0_i32, %c0_i32_0 : i32, i32
  }
  func.func @transform_10(%arg0: i32) -> (i32, i32) {
    %c0_i32 = arith.constant 0 : i32
    %c0_i32_0 = arith.constant 0 : i32
    return %arg0, %c0_i32 : i32, i32
  }
}

</mosaic_0001>

<bundles_post_ra>
// kernel: tpu_custom_call.1
= control target key start
LH: loop header
LB: loop body
LE: loop exit
PB: predicated region body
PF: predicated region fallthrough
CT: control target
= control target key end

     0   :  { %15 = vsyncpa [#allocation3], 0  ;;  %s1011_s0 = inlined_call_operand.hbm [shape: bf16[8,32], index: 0, kind: input, shape index: {}]   ;;  %s1012_s1 = inlined_call_operand.hbm [shape: bf16[32,640], index: 1, kind: input, shape index: {}]   ;;  %s1013_s2 = inlined_call_operand.hbm [shape: f32[1,640], index: 2, kind: input, shape index: {}]   ;;  %s1014_s3 = inlined_call_operand.hbm [shape: f32[1,640], index: 3, kind: input, shape index: {}]   ;;  %s1015_s4 = inlined_call_operand.hbm [shape: bf16[128,128], index: 4, kind: input, shape index: {}]   ;;  %s1016_s5 = inlined_call_operand.vmem [shape: f32[1,128], index: 5, kind: input, shape index: {}]   ;;  %s1017_s6 = inlined_call_operand.vmem [shape: f32[1,128], index: 6, kind: input, shape index: {}]   ;;  %s1018_s7 = inlined_call_operand.hbm [shape: bf16[128,128], index: 7, kind: input, shape index: {}]   ;;  %s1019_s8 = inlined_call_operand.vmem [shape: f32[1,128], index: 8, kind: input, shape index: {}]   ;;  %s1020_s9 = inlined_call_operand.vmem [shape: f32[1,128], index: 9, kind: input, shape index: {}]   ;;  %s1021_s10 = inlined_call_operand.hbm [shape: f32[8,384], index: 10, kind: output, shape index: {}]  }
   0x1   :  { %16 = vsyncpa [#allocation6], 0 }
   0x2   :  { %17 = vsyncpa [#allocation9], 0 }
   0x3   :  { %18 = vsyncpa [#allocation12], 0  ;;  %s35_s15 = sshll.u32 %s1012_s1, 4  ;;  %s36_s15 = int_to_ptr.hbm [resolvable:$true] %s35_s15 }
   0x4   :  { %19 = vsyncpa [#allocation4], 0  ;;  %s874_s16 = smov [#allocation5]   ;;  %s60_s20 = sshll.u32 %s1014_s3, 4  ;;  %s61_s20 = int_to_ptr.hbm [resolvable:$true] %s60_s20 }
   0x5   :  { %s37_s17 = sshll.u32 %s874_s16, 4  ;;  %s875_s21 = smov 320   ;;  %s38_s17 = int_to_ptr.vmem [resolvable:$true] %s37_s17 }
   0x6   :  { %s876_s22 = smov 20   ;;  %s877_s23 = smov [#allocation8]  }
   0x7   :  { %43 = dma.hbm_to_vmem [thread:$0]  %s36_s15, 1280, %s38_s17, [#allocation6], %s875_s21, %s875_s21, %s876_s22  }
   0x8   :  { %s62_s24 = sshll.u32 %s877_s23, 4  ;;  %s25_s27 = sshll.u32 %s1011_s0, 4  ;;  %s63_s24 = int_to_ptr.vmem [resolvable:$true] %s62_s24  ;;  %s26_s27 = int_to_ptr.hbm [resolvable:$true] %s25_s27 }
   0x9   :  { %65 = dma.hbm_to_vmem [thread:$0]  %s61_s20, 80, %s63_s24, [#allocation9]  }
   0xa   :  { %s49_s29 = sshll.u32 %s1013_s2, 4  ;;  %s878_s30 = smov [#allocation2]   ;;  %s50_s29 = int_to_ptr.hbm [resolvable:$true] %s49_s29 }
   0xb   :  { %s27_s11 = sshll.u32 %s878_s30, 4  ;;  %s879_s3 = smov [#allocation7]   ;;  %s28_s11 = int_to_ptr.vmem [resolvable:$true] %s27_s11 }
   0xc   :  { %30 = dma.hbm_to_vmem [thread:$0]  %s26_s27, 64, %s28_s11, [#allocation3]  }
   0xd   :  { %s51_s12 = sshll.u32 %s879_s3, 4  ;;  %s70_s15 = sshll.u32 %s1015_s4, 4  ;;  %s52_s12 = int_to_ptr.vmem [resolvable:$true] %s51_s12  ;;  %s71_s15 = int_to_ptr.hbm [resolvable:$true] %s70_s15 }
   0xe   :  { %54 = dma.hbm_to_vmem [thread:$0]  %s50_s29, 80, %s52_s12, [#allocation6]  }
   0xf   :  { %s880_s0 = smov [#allocation10]   ;;  %s87_s2 = sshll.u32 %s1018_s7, 4  ;;  %s88_s2 = int_to_ptr.hbm [resolvable:$true] %s87_s2 }
  0x10   :  { %s72_s16 = sshll.u32 %s880_s0, 4  ;;  %s881_s19 = smov 64   ;;  %s73_s16 = int_to_ptr.vmem [resolvable:$true] %s72_s16 }
  0x11   :  { %s882_s20 = smov 4   ;;  %s883_s21 = smov [#allocation11]  }
  0x12   :  { %78 = dma.hbm_to_vmem [thread:$0]  %s71_s15, 1024, %s73_s16, [#allocation9], %s881_s19, %s881_s19, %s882_s20  }
  0x13   :  { %s89_s22 = sshll.u32 %s883_s21, 4  ;;  %s90_s22 = int_to_ptr.vmem [resolvable:$true] %s89_s22 }
  0x14   :  { %95 = dma.hbm_to_vmem [thread:$0]  %s88_s2, 1024, %s90_s22, [#allocation12], %s881_s19, %s881_s19, %s882_s20  }
  0x15   :  { %864 = dma.done.wait [#allocation3], 64  }
  0x16   :  { %865 = vsyncadd [#allocation3], 4294967232 }
  0x17   :  { %866 = dma.done.wait [#allocation6], 1360  }
  0x18   :  { %867 = vsyncadd [#allocation6], 4294965936 }
  0x19   :  { %868 = dma.done.wait [#allocation9], 1104  }
  0x1a   :  { %869 = vsyncadd [#allocation9], 4294966192 }
  0x1b   :  { %870 = dma.done.wait [#allocation12], 1024  }
  0x1c   :  { %871 = vsyncadd [#allocation12], 4294966272  ;;  %v555_v0 = vld [vmem:[#allocation5 + $0x28] sm:$0xf]  ;;  %v649_v1 = vld [vmem:[#allocation5 + $0x38] sm:$0xf0] }
  0x1d   :  { %v535_v2 = vld [vmem:[#allocation5] sm:$0xf]  ;;  %v556_v3 = vor.u32 %v649_v1, %v555_v0  ;;  %v644_v4 = vld [vmem:[#allocation5 + $0x10] sm:$0xf0]  ;;  %v658_v7 = vld [vmem:[#allocation10 + $0x30] sm:$0xff]  ;;  %vm202_vm0 = vcmask 261120  }
  0x1e   :  { %v659_v5 = vld [vmem:[#allocation10 + $0x38] sm:$0xff]  ;;  %v536_v6 = vor.u32 %v644_v4, %v535_v2  ;;  %v962_v8 = vld [vmem:[#allocation2] sm:$0xf]  ;;  %v657_v9 = vld [vmem:[#allocation10 + $0x28] sm:$0xff]  ;;  %s520_s28 = sshll.u32 %s1021_s10, 4  ;;  %s521_s28 = int_to_ptr.hbm [resolvable:$true] %s520_s28 }
  0x1f   :  { %212 = vmatpush.bf16.msra.mxu0 %v556_v3  ;;  %367 = vmatpush.bf16.msra.mxu1 %v659_v5  ;;  %v656_v10 = vld [vmem:[#allocation10 + $0x20] sm:$0xff]  ;;  %v655_v11 = vld [vmem:[#allocation10 + $0x18] sm:$0xff]  ;;  %v654_v12 = vld [vmem:[#allocation10 + $0x10] sm:$0xff] }
  0x20   :  { %v653_v13 = vld [vmem:[#allocation10 + $0x8] sm:$0xff]  ;;  %v652_v14 = vld [vmem:[#allocation10] sm:$0xff]  ;;  %v563_v15 = vld [vmem:[#allocation5 + $0x30] sm:$0xf] }
  0x21   :  { %v650_v16 = vld [vmem:[#allocation5 + $0x40] sm:$0xf0]  ;;  %v543_v17 = vld [vmem:[#allocation5 + $0x8] sm:$0xf]  ;;  %v645_v19 = vld [vmem:[#allocation5 + $0x18] sm:$0xf0] }
  0x22   :  { %v564_v18 = vor.u32 %v650_v16, %v563_v15  ;;  %v544_v20 = vor.u32 %v645_v19, %v543_v17  ;;  %v667_v21 = vld [vmem:[#allocation11 + $0x38] sm:$0xff]  ;;  %v666_v22 = vld [vmem:[#allocation11 + $0x30] sm:$0xff]  ;;  %v665_v23 = vld [vmem:[#allocation11 + $0x28] sm:$0xff]  ;;  %v884_v15 = vmov 2   ;;  %v885_v16 = vmov 0  }
  0x23   :  { %213 = vmatpush.bf16.msra.mxu0 %v536_v6  ;;  %368 = vmatpush.bf16.msra.mxu1 %v658_v7  ;;  %v664_v24 = vld [vmem:[#allocation11 + $0x20] sm:$0xff]  ;;  %v968_v25 = vld [vmem:[#allocation7] sm:$0x1f]  ;;  %v970_v26 = vld [vmem:[#allocation8] sm:$0x1f]  ;;  %v886_v17 = vmov 3  }
  0x24   :  { %238 = vmatpush.bf16.msra.mxu2 %v564_v18  ;;  %v663_v27 = vld [vmem:[#allocation11 + $0x18] sm:$0xff]  ;;  %v140_v28 = vperm.slane %v968_v25, 0  ;;  %v278_v29 = vperm.slane %v970_v26, 0  ;;  %v662_v31 = vld [vmem:[#allocation11 + $0x10] sm:$0xff]  ;;  %v661_v37 = vld [vmem:[#allocation11 + $0x8] sm:$0xff]  ;;  %685 = vset.pattern.permute.xlu2 %v884_v15 }
  0x25   :  { %v660_v38 = vld [vmem:[#allocation11] sm:$0xff]  ;;  %v647_v56 = vld [vmem:[#allocation5 + $0x2c] sm:$0xf]  ;;  %v642_v58 = vld [vmem:[#allocation5 + $0x4] sm:$0xf]  ;;  %683 = vset.pattern.permute.xlu1 %v885_v16  ;;  %687 = vset.pattern.permute.xlu0 %v886_v17 }
  0x26   :  { %573 = vmatmul.msk.bf16.vlgmr.msra.gmra.mxu0 %vm202_vm0, %v962_v8  ;;  %v688_v41 = vld [vmem:[%s1016_s5] ss:$0 sm:$0xff]  ;;  %v557_v57 = vld [vmem:[#allocation5 + $0x3c] sm:$0xf0]  ;;  %v537_v60 = vld [vmem:[#allocation5 + $0x14] sm:$0xf0] }
  0x27   :  { %369 = vmatpush.bf16.msra.mxu1 %v657_v9  ;;  %v689_v42 = vld [vmem:[%s1017_s6] ss:$0 sm:$0xff]  ;;  %v560_v59 = vor.u32 %v647_v56, %v557_v57  ;;  %v648_v61 = vld [vmem:[#allocation5 + $0x34] sm:$0xf]  ;;  %v565_v62 = vld [vmem:[#allocation5 + $0x44] sm:$0xf0]  ;;  %v540_v0 = vor.u32 %v642_v58, %v537_v60 }
  0x28   :  { %239 = vmatpush.bf16.msra.mxu2 %v544_v20  ;;  %v690_v49 = vld [vmem:[%s1019_s8] ss:$0 sm:$0xff]  ;;  %v571_v63 = vld [vmem:[#allocation5 + $0x38] sm:$0xf]  ;;  %v651_v1 = vld [vmem:[#allocation5 + $0x48] sm:$0xf0]  ;;  %v568_v4 = vor.u32 %v648_v61, %v565_v62 }
  0x29   :  { %v691_v50 = vld [vmem:[%s1020_s9] ss:$0 sm:$0xff]  ;;  %225 = vmatpush.bf16.msra.mxu3 %v560_v59  ;;  %v551_v2 = vld [vmem:[#allocation5 + $0x10] sm:$0xf]  ;;  %v646_v3 = vld [vmem:[#allocation5 + $0x20] sm:$0xf0]  ;;  %v572_v5 = vor.u32 %v651_v1, %v571_v63 }
  0x2a   :  { %v643_v6 = vld [vmem:[#allocation5 + $0xc] sm:$0xf]  ;;  %v545_v7 = vld [vmem:[#allocation5 + $0x1c] sm:$0xf0]  ;;  %v552_v9 = vor.u32 %v646_v3, %v551_v2  ;;  %s888_s5 = smov [#allocation13]  }
  0x2b   :  { %370 = vmatpush.bf16.msra.mxu1 %v656_v10  ;;  %575 = vmatmul.msk.bf16.vlgmr.msra.gmra.mxu2 %vm202_vm0, %v962_v8  ;;  %v548_v10 = vor.u32 %v643_v6, %v545_v7  ;;  %s518_s6 = sshll.u32 %s888_s5, 4  ;;  %s519_s6 = int_to_ptr.vmem [resolvable:$true] %s518_s6 }
  0x2c   :  { %456 = vmatpush.bf16.msrb.mxu2 %v667_v21  ;;  %264 = vmatpush.bf16.msrb.mxu0 %v572_v5 }
  0x2d   :  { %226 = vmatpush.bf16.msra.mxu3 %v540_v0 }
  0x2f   :  { %371 = vmatpush.bf16.msra.mxu1 %v655_v11 }
  0x30   :  { %457 = vmatpush.bf16.msrb.mxu2 %v666_v22  ;;  %574 = vmatmul.msk.bf16.vlgmr.msra.gmra.mxu3 %vm202_vm0, %v962_v8 }
  0x31   :  { %251 = vmatpush.bf16.msrb.mxu3 %v568_v4  ;;  %265 = vmatpush.bf16.msrb.mxu0 %v552_v9 }
  0x33   :  { %372 = vmatpush.bf16.msra.mxu1 %v654_v12 }
  0x34   :  { %458 = vmatpush.bf16.msrb.mxu2 %v665_v23 }
  0x35   :  { %252 = vmatpush.bf16.msrb.mxu3 %v548_v10 }
  0x36   :  { %577 = vmatmul.msk.bf16.vlgmr.msrb.gmra.mxu0 %vm202_vm0, %v962_v8 }
  0x37   :  { %373 = vmatpush.bf16.msra.mxu1 %v653_v13 }
  0x38   :  { %459 = vmatpush.bf16.msrb.mxu2 %v664_v24 }
  0x3b   :  { %374 = vmatpush.bf16.msra.mxu1 %v652_v14 }
  0x3c   :  { %460 = vmatpush.bf16.msrb.mxu2 %v663_v27 }
  0x40   :  { %461 = vmatpush.bf16.msrb.mxu2 %v662_v31  ;;  %576 = vmatmul.msk.bf16.vlgmr.msrb.gmra.mxu3 %vm202_vm0, %v962_v8  ;;  %v887_v8 = vmov 1   ;;  %v143_v31 = vperm.slane %v968_v25, 3 }
  0x44   :  { %462 = vmatpush.bf16.msrb.mxu2 %v661_v37 }
  0x48   :  { %463 = vmatpush.bf16.msrb.mxu2 %v660_v38  ;;  %v279_v38 = vperm.slane %v970_v26, 1 }
  0xa3   :  { %v215_v30 = vpop.f32.mrf.mxu0 }
  0xa4   :  { %v216_v32 = vadd.f32 %v215_v30, %v140_v28  ;;  %v141_v30 = vperm.slane %v968_v25, 1 }
  0xa6   :  { %v288_v33 = vmul.f32 %v278_v29, %v216_v32  ;;  %vm271_vm1 = vcmp.ge.f32.partialorder %v216_v32, 0.0  ;;  %v142_v29 = vperm.slane %v968_v25, 2 }
  0xa8   :  { %v974_v34 = vsel %vm271_vm1, %v216_v32, %v288_v33  ;;  %v144_v32 = vperm.slane %v968_v25, 4 }
  0xa9   :  { %v298_v35 = vpack.c.bf16 %v974_v34, %v974_v34 }
  0xab   :  { %v217_v36 = vpop.f32.mrf.mxu0  ;;  %375 = vmatmul.bf16.vlgmr.msra.gmra.mxu1 %v298_v35  ;;  %v280_v35 = vperm.slane %v970_v26, 2 }
  0xae   :  { %v978_v39 = vpop.f32.mrf.mxu2 }
  0xaf   :  { %v242_v33 = vadd.f32 %v978_v39, %v142_v29 }
  0xb1   :  { %vm273_vm6 = vcmp.ge.f32.partialorder %v242_v33, 0.0 }
  0xb3   :  { %v228_v18 = vpop.f32.mrf.mxu3  ;;  %v267_v27 = vpop.f32.mrf.mxu0 }
  0xb4   :  { %v229_v37 = vadd.f32 %v228_v18, %v141_v30 }
  0xb6   :  { %v243_v40 = vpop.f32.mrf.mxu2  ;;  %vm272_vm5 = vcmp.ge.f32.partialorder %v229_v37, 0.0 }
  0xbb   :  { %v230_v20 = vpop.f32.mrf.mxu3  ;;  %v269_v28 = vpop.f32.mrf.mxu0 }
  0xc3   :  { %v254_v23 = vpop.f32.mrf.mxu3 }
  0xc4   :  { %v255_v40 = vadd.f32 %v254_v23, %v143_v31 }
  0xc6   :  { %vm274_vm4 = vcmp.ge.f32.partialorder %v255_v40, 0.0 }
  0xcb   :  { %v256_v24 = vpop.f32.mrf.mxu3 }
 0x128   :  { %v376_v43 = vpop.f32.mrf.mxu1 }
 0x129   :  { %v377_v44 = vadd.f32 %v688_v41, %v376_v43  ;;  %v281_v41 = vperm.slane %v970_v26, 3  ;;  %v268_v43 = vadd.f32 %v267_v27, %v144_v32 }
 0x12b   :  { %vm380_vm2 = vcmp.ge.f32.partialorder %v377_v44, 0.0  ;;  %v385_v45 = vmul.f32 %v689_v42, %v377_v44  ;;  %vm275_vm7 = vcmp.ge.f32.partialorder %v268_v43, 0.0 }
 0x12d   :  { %v386_v46 = vsel %vm380_vm2, %v377_v44, %v385_v45  ;;  %v282_v44 = vperm.slane %v970_v26, 4  ;;  %v290_v45 = vmul.f32 %v280_v35, %v242_v33 }
 0x12e   :  { %v387_v47 = vpack.c.bf16 %v386_v46, %v386_v46  ;;  %510 = vst [vmem:[#allocation13] sm:$0xff] %v386_v46  ;;  %v289_v46 = vmul.f32 %v279_v38, %v229_v37 }
 0x12f   :  { %v292_v25 = vmul.f32 %v282_v44, %v268_v43 }
 0x130   :  { %v378_v48 = vpop.f32.mrf.mxu1  ;;  %464 = vmatmul.bf16.vlgmr.msrb.gmra.mxu2 %v387_v47  ;;  %v291_v47 = vmul.f32 %v281_v41, %v255_v40 }
 0x131   :  { %v294_v48 = vsel %vm272_vm5, %v229_v37, %v289_v46 }
 0x132   :  { %v296_v39 = vsel %vm274_vm4, %v255_v40, %v291_v47 }
 0x1b3   :  { %v465_v51 = vpop.f32.mrf.mxu2 }
 0x1b4   :  { %v466_v52 = vadd.f32 %v690_v49, %v465_v51  ;;  %v295_v49 = vsel %vm273_vm6, %v242_v33, %v290_v45 }
 0x1b6   :  { %vm469_vm3 = vcmp.ge.f32.partialorder %v466_v52, 0.0  ;;  %v474_v53 = vmul.f32 %v691_v50, %v466_v52 }
 0x1b8   :  { %v475_v54 = vsel %vm469_vm3, %v466_v52, %v474_v53  ;;  %v297_v53 = vsel %vm275_vm7, %v268_v43, %v292_v25 }
 0x1b9   :  { %476 = vmax.xlane.f32.xlu0 %v475_v54 }
 0x1bb   :  { %v467_v55 = vpop.f32.mrf.mxu2 }
 0x22c   :  { %v477_v11 = vpop.xlane.xlu0 %476 }
 0x22d   :  { %v478_v12 = vsub.f32 %v475_v54, %v477_v11 }
 0x22f   :  { %v479_v13 = vmul.f32 1.442695, %v478_v12 }
 0x231   :  { %692 = vpow2.f32 %v479_v13 }
 0x237   :  { %v693_v14 = vpop.eup %692 }
 0x238   :  { %481 = vadd.xlane.f32.xlu0 %v693_v14 }
 0x2ab   :  { %v482_v19 = vpop.xlane.xlu0 %481 }
 0x2ac   :  { %694 = vrcp.f32 %v482_v19 }
 0x2b2   :  { %v695_v21 = vpop.eup %694 }
 0x2b3   :  { %v484_v22 = vmul.f32 %v695_v21, %v693_v14 }
 0x2b5   :  { %512 = vst [vmem:[#allocation13 + $0x10] sm:$0xff] %v484_v22  ;;  %498 = vperm.xlu2 %685, %v484_v22   ;;  %487 = vperm.xlu1 %683, %v484_v22  }
 0x2bd   :  { %686 = vset.pattern.permute.xlu2 %v886_v17  ;;  %684 = vset.pattern.permute.xlu1 %v887_v8 }
 0x2be   :  { %504 = vperm.xlu2 %686, %v484_v22   ;;  %492 = vperm.xlu1 %684, %v484_v22  }
 0x30f   :  { %v499_v42 = vpop.permute.xlu2 %498 }
 0x310   :  { %v501_v55 = vmul.f32 %v499_v42, %v296_v39 }
 0x318   :  { %v505_v54 = vpop.permute.xlu2 %504 }
 0x319   :  { %v507_v57 = vmul.f32 %v505_v54, %v297_v53 }
 0x327   :  { %v488_v36 = vpop.permute.xlu1 %487 }
 0x328   :  { %v490_v51 = vmul.f32 %v488_v36, %v294_v48 }
 0x330   :  { %v493_v50 = vpop.permute.xlu1 %492 }
 0x331   :  { %v495_v52 = vmul.f32 %v493_v50, %v295_v49 }
 0x333   :  { %v496_v56 = vadd.f32 %v495_v52, %v490_v51 }
 0x335   :  { %v502_v26 = vadd.f32 %v501_v55, %v496_v56 }
 0x337   :  { %v508_v58 = vadd.f32 %v507_v57, %v502_v26 }
 0x339   :  { %v509_v59 = vadd.f32 %v508_v58, %v974_v34 }
 0x33b   :  { %511 = vst [vmem:[#allocation13 + $0x8] sm:$0xff] %v509_v59 }
 0x33c   :  { %523 = dma.vmem_to_hbm [thread:$0]  %s519_s6, 384, %s521_s28, [#allocation4]  }
 0x33d   :  { %872 = dma.done.wait [#allocation4], 384  }
 0x33e   :  { %873 = vsyncadd [#allocation4], 4294966912 }
 0x33f   :  { %528 = vsyncpa [#allocation3], 1 }
 0x340   :  { %529 = vsyncpa [#allocation6], 1 }
 0x341   :  { %530 = vsyncpa [#allocation9], 1 }
 0x342   :  { %531 = vsyncpa [#allocation12], 1 }
 0x343   :  { %532 = vsyncpa [#allocation4], 1 }

</bundles_post_ra>
